<compile_context>
chip_gen: v7x
topology: tpu7x:2x2x1
jax: 0.10.0
libtpu: 0.0.40
codegen_flags: <defaults>
</compile_context>

<pallas_src>
import functools

import jax
import jax.numpy as jnp
from jax import lax
from jax.experimental import pallas as pl
from jax.experimental.pallas import tpu as pltpu


def _round_up(x: int, m: int) -> int:
    return ((x + m - 1) // m) * m


def _cdiv(a: int, b: int) -> int:
    return (a + b - 1) // b


# ---------------------------------------------------------------------------
# Kernel body
# ---------------------------------------------------------------------------
def _fc_kernel(x_ref, w_ref, b_ref, o_ref, *scratch, use_activation: bool,
               compute_dtype, mask_k: bool, d_in: int, tk: int,
               single_k: bool):
    # x_ref: (tm, tk)   w_ref: (tn, tk)  (PyTorch (out, in) layout)
    # b_ref: (1, tn)    o_ref: (tm, tn)  scratch: [(tm, tn) f32] iff !single_k
    k = 0 if single_k else pl.program_id(2)

    x = x_ref[...].astype(compute_dtype)
    w = w_ref[...].astype(compute_dtype)

    if mask_k:
        # Last K block is ragged: zero out-of-range columns of BOTH operands so
        # out-of-bounds garbage (possibly NaN) never reaches the accumulator.
        base = k * tk
        zero = jnp.zeros((), compute_dtype)
        xcol = lax.broadcasted_iota(jnp.int32, x.shape, 1) + base
        wcol = lax.broadcasted_iota(jnp.int32, w.shape, 1) + base
        x = jnp.where(xcol < d_in, x, zero)
        w = jnp.where(wcol < d_in, w, zero)

    # Contract x's dim 1 with w's dim 1 (i.e. x @ W.T) directly on the MXU --
    # no wrapper-side weight transpose / HBM copy.
    part = lax.dot_general(
        x, w,
        dimension_numbers=(((1,), (1,)), ((), ())),
        preferred_element_type=jnp.float32,
    )

    def _finalize(acc_f32):
        y = acc_f32 + b_ref[...].astype(jnp.float32)
        if use_activation:
            y = jnp.maximum(y, 0.0)
        o_ref[...] = y.astype(o_ref.dtype)

    if single_k:
        # Fast path: no accumulator RMW, no pl.when.
        _finalize(part)
    else:
        (acc_ref,) = scratch

        @pl.when(k == 0)
        def _():
            acc_ref[...] = jnp.zeros_like(acc_ref)

        acc_ref[...] += part

        @pl.when(k == pl.num_programs(2) - 1)
        def _():
            _finalize(acc_ref[...])


# ---------------------------------------------------------------------------
# Generation-aware defaults
# ---------------------------------------------------------------------------
def _default_config():
    kind = ""
    try:
        kind = jax.devices()[0].device_kind.lower()
    except Exception:
        pass
    if "v7" in kind:
        # v7x: only 64 MiB VMEM / TC; 2 TCs/chip -> keep >=2 parallel blocks.
        return dict(tm=1024, tn=1024, tk=1024,
                    vmem=48 * 1024 * 1024, want_two_blocks=True)
    if "v6" in kind:
        return dict(tm=1024, tn=1024, tk=1024,
                    vmem=96 * 1024 * 1024, want_two_blocks=False)
    # v5e / v5p / unknown: conservative.
    return dict(tm=512, tn=512, tk=1024,
                vmem=32 * 1024 * 1024, want_two_blocks=False)


def _fit_to_vmem(tm, tn, tk, budget, x_item, w_item, b_item, o_item):
    """Safety net: shrink tiles until the double-buffered footprint fits."""
    def fp(tm_, tn_, tk_):
        return (2 * tm_ * tk_ * x_item + 2 * tn_ * tk_ * w_item
                + 2 * tn_ * b_item + tm_ * tn_ * 4 + 2 * tm_ * tn_ * o_item)

    for _ in range(32):
        if fp(tm, tn, tk) <= budget:
            break
        if tk > 512:                       # K first: only costs amortization
            tk = max(512, (tk // 2) // 128 * 128)
        elif tn >= tm and tn > 128:
            tn = max(128, (tn // 2) // 128 * 128)
        elif tm > 16:
            tm = max(16, (tm // 2) // 8 * 8)
        elif tn > 128:
            tn = max(128, (tn // 2) // 128 * 128)
        else:
            break
    return tm, tn, tk


# ---------------------------------------------------------------------------
# Public wrapper
# ---------------------------------------------------------------------------
def fc_layer(
    x,
    weight,
    bias,
    *,
    use_activation: bool = True,
    dropout_rate: float = 0.0,
    tm: int | None = None,
    tn: int | None = None,
    tk: int | None = None,
    compute_dtype=jnp.bfloat16,
    out_dtype=None,
    vmem_limit_bytes: int | None = None,
):
    """Pallas equivalent of FCLayer.forward.

    x:      (B, D_in)
    weight: (D_out, D_in)   (PyTorch nn.Linear convention -- NOT transposed)
    bias:   (D_out,)
    returns (B, D_out) in out_dtype (default: x.dtype)
    """
    # TODO(synk): implement p>0 dropout with pltpu.prng_* if training is needed.
    assert dropout_rate == 0.0, "only p=0 (identity) dropout is implemented"

    B, D_in = x.shape
    D_out, D_in_w = weight.shape
    assert D_in_w == D_in
    assert bias.shape == (D_out,)

    out_dtype = jnp.dtype(out_dtype or x.dtype)
    cfg = _default_config()
    tm = tm or cfg["tm"]
    tn = tn or cfg["tn"]
    tk = tk or cfg["tk"]
    vmem_limit = vmem_limit_bytes or cfg["vmem"]

    # ---- tile clamping ----------------------------------------------------
    # Whole-batch M panel when B is modest -> W streamed from HBM exactly once.
    tm = min(tm, _round_up(B, 16))
    tn = min(tn, _round_up(D_out, 128))
    if D_in <= tk:
        tk = _round_up(D_in, 128)
    elif D_in % 128 == 0:
        # Prefer a 128-multiple divisor of D_in so no K block is ragged.
        for cand in range(tk, 255, -128):
            if D_in % cand == 0:
                tk = cand
                break

    # v7x: make sure both TensorCores get at least one block of work.
    if cfg["want_two_blocks"]:
        if _cdiv(B, tm) * _cdiv(D_out, tn) < 2:
            if D_out > 128:
                tn = _round_up(_cdiv(D_out, 2), 128)
            elif B > 16:
                tm = _round_up(_cdiv(B, 2), 16)

    x_item = jnp.dtype(x.dtype).itemsize
    w_item = jnp.dtype(weight.dtype).itemsize
    b_item = jnp.dtype(bias.dtype).itemsize
    o_item = out_dtype.itemsize
    tm, tn, tk = _fit_to_vmem(tm, tn, tk, int(vmem_limit * 0.9),
                              x_item, w_item, b_item, o_item)

    gm, gn, gk = _cdiv(B, tm), _cdiv(D_out, tn), _cdiv(D_in, tk)
    mask_k = (D_in % tk) != 0
    single_k = gk == 1

    bias2d = bias.reshape(1, D_out)

    kernel = functools.partial(
        _fc_kernel,
        use_activation=use_activation,
        compute_dtype=compute_dtype,
        mask_k=mask_k,
        d_in=D_in,
        tk=tk,
        single_k=single_k,
    )

    if single_k:
        grid = (gm, gn)
        in_specs = [
            pl.BlockSpec((tm, tk), lambda i, j: (i, 0)),   # x tile
            pl.BlockSpec((tn, tk), lambda i, j: (j, 0)),   # W tile (out, in)
            pl.BlockSpec((1, tn), lambda i, j: (0, j)),    # bias tile
        ]
        out_specs = pl.BlockSpec((tm, tn), lambda i, j: (i, j))
        scratch_shapes = []
        dim_sem = ("parallel", "parallel")
    else:
        grid = (gm, gn, gk)
        in_specs = [
            pl.BlockSpec((tm, tk), lambda i, j, k: (i, k)),
            pl.BlockSpec((tn, tk), lambda i, j, k: (j, k)),
            pl.BlockSpec((1, tn), lambda i, j, k: (0, j)),
        ]
        out_specs = pl.BlockSpec((tm, tn), lambda i, j, k: (i, j))
        scratch_shapes = [pltpu.VMEM((tm, tn), jnp.float32)]
        dim_sem = ("parallel", "parallel", "arbitrary")

    # Honest traffic estimate: x re-read once per N block, W once per M block.
    bytes_accessed = int(
        gn * B * D_in * x_item
        + gm * D_out * D_in * w_item
        + gm * D_out * b_item
        + B * D_out * o_item
    )
    flops = int(2 * (gm * tm) * (gn * tn) * (gk * tk))

    return pl.pallas_call(
        kernel,
        out_shape=jax.ShapeDtypeStruct((B, D_out), out_dtype),
        grid_spec=pltpu.PrefetchScalarGridSpec(
            num_scalar_prefetch=0,
            grid=grid,
            in_specs=in_specs,
            out_specs=out_specs,
            scratch_shapes=scratch_shapes,
        ),
        compiler_params=pltpu.CompilerParams(
            dimension_semantics=dim_sem,
            vmem_limit_bytes=int(vmem_limit),
        ),
        cost_estimate=pl.CostEstimate(
            flops=flops,
            transcendentals=0,
            bytes_accessed=bytes_accessed,
        ),
    )(x, weight, bias2d)


# ---------------------------------------------------------------------------
# Reference + tests
# ---------------------------------------------------------------------------
def _reference_bf16(x, weight, bias, use_activation=True):
    # Same numerics as the kernel: bf16 operands, f32 accumulation.
    y = jnp.dot(
        x.astype(jnp.bfloat16),
        weight.astype(jnp.bfloat16).T,
        preferred_element_type=jnp.float32,
    ) + bias.astype(jnp.float32)
    if use_activation:
        y = jnp.maximum(y, 0.0)
    return y.astype(x.dtype)


def _make_case(key, batch, d_in, d_out):
    kx, kw, kb = jax.random.split(key, 3)
    bound = 1.0 / (d_in ** 0.5)
    x = jax.random.normal(kx, (batch, d_in), dtype=jnp.float32)
    w = jax.random.uniform(kw, (d_out, d_in), jnp.float32,
                           minval=-bound, maxval=bound)
    b = jax.random.uniform(kb, (d_out,), jnp.float32,
                           minval=-bound, maxval=bound)
    return x, w, b


if __name__ == "__main__":
    key = jax.random.PRNGKey(0)
    k1, k2, k3 = jax.random.split(key, 3)

    # --- Case 1: the module's nominal small shapes (single-K + K masking) --
    x, w, b = _make_case(k1, batch=8, d_in=32, d_out=64)
    out = jax.block_until_ready(fc_layer(x, w, b, use_activation=True))
    assert out.shape == (8, 64)
    ref_bf16 = _reference_bf16(x, w, b, use_activation=True)
    ref_f32 = jnp.maximum(x @ w.T + b, 0.0)
    assert jnp.allclose(out, ref_bf16, atol=1e-3, rtol=1e-3)
    assert jnp.allclose(out, ref_f32, atol=5e-2, rtol=5e-2)

    # --- Case 2: aligned shapes, no padding / masking, fast path -----------
    x2, w2, b2 = _make_case(k2, batch=64, d_in=256, d_out=384)
    y2 = jax.block_until_ready(fc_layer(x2, w2, b2, use_activation=False))
    assert y2.shape == (64, 384)
    ref2_bf16 = _reference_bf16(x2, w2, b2, use_activation=False)
    ref2_f32 = x2 @ w2.T + b2
    assert jnp.allclose(y2, ref2_bf16, atol=2e-3, rtol=2e-3)
    assert jnp.allclose(y2, ref2_f32, atol=5e-2, rtol=5e-2)

    # --- Case 3: multi-K accumulation with a ragged last K block -----------
    x3, w3, b3 = _make_case(k3, batch=32, d_in=1300, d_out=200)
    y3 = jax.block_until_ready(fc_layer(x3, w3, b3, use_activation=True))
    assert y3.shape == (32, 200)
    ref3_bf16 = _reference_bf16(x3, w3, b3, use_activation=True)
    assert jnp.allclose(y3, ref3_bf16, atol=2e-2, rtol=2e-2)
    assert bool(jnp.all(jnp.isfinite(y3)))

    print("KERNEL_OK")
</pallas_src>

<mosaic_0001>
module attributes {stable_mosaic.version = 11 : i64} {
  func.func @_fc_kernel(%arg0: i32, %arg1: i32, %arg2: memref<16x128xf32, #tpu.memory_space<vmem>>, %arg3: memref<128x128xf32, #tpu.memory_space<vmem>>, %arg4: memref<1x128xf32, #tpu.memory_space<vmem>>, %arg5: memref<16x128xf32, #tpu.memory_space<vmem>>) attributes {dimension_semantics = [#tpu.dimension_semantics<parallel>, #tpu.dimension_semantics<parallel>], iteration_bounds = array<i64: 1, 1>, scalar_prefetch = 0 : i64, scratch_operands = 0 : i64, tpu.core_type = #tpu.core_type<tc>, window_params = [{transform_indices = @transform_0, window_bounds = array<i64: 16, 128>}, {transform_indices = @transform_1, window_bounds = array<i64: 128, 128>}, {transform_indices = @transform_2, window_bounds = array<i64: 1, 128>}, {transform_indices = @transform_3, window_bounds = array<i64: 16, 128>}]} {
    %c0 = arith.constant 0 : index
    %c0_0 = arith.constant 0 : index
    %0 = vector.load %arg2[%c0, %c0_0] : memref<16x128xf32, #tpu.memory_space<vmem>>, vector<16x128xf32>
    %1 = arith.truncf %0 : vector<16x128xf32> to vector<16x128xbf16>
    %c0_1 = arith.constant 0 : index
    %c0_2 = arith.constant 0 : index
    %2 = vector.load %arg3[%c0_1, %c0_2] : memref<128x128xf32, #tpu.memory_space<vmem>>, vector<128x128xf32>
    %3 = arith.truncf %2 : vector<128x128xf32> to vector<128x128xbf16>
    %4 = tpu.iota {dimensions = array<i32: 1>} : vector<16x128xi32>
    %c0_i32 = arith.constant 0 : i32
    %5 = vector.broadcast %c0_i32 : i32 to vector<16x128xi32>
    %6 = arith.addi %4, %5 : vector<16x128xi32>
    %7 = tpu.iota {dimensions = array<i32: 1>} : vector<128x128xi32>
    %c0_i32_3 = arith.constant 0 : i32
    %8 = vector.broadcast %c0_i32_3 : i32 to vector<128x128xi32>
    %9 = arith.addi %7, %8 : vector<128x128xi32>
    %c32_i32 = arith.constant 32 : i32
    %10 = vector.broadcast %c32_i32 : i32 to vector<16x128xi32>
    %11 = arith.cmpi slt, %6, %10 : vector<16x128xi32>
    %cst = arith.constant 0.000000e+00 : bf16
    %12 = vector.broadcast %cst : bf16 to vector<16x128xbf16>
    %13 = arith.select %11, %1, %12 : vector<16x128xi1>, vector<16x128xbf16>
    %c32_i32_4 = arith.constant 32 : i32
    %14 = vector.broadcast %c32_i32_4 : i32 to vector<128x128xi32>
    %15 = arith.cmpi slt, %9, %14 : vector<128x128xi32>
    %cst_5 = arith.constant 0.000000e+00 : bf16
    %16 = vector.broadcast %cst_5 : bf16 to vector<128x128xbf16>
    %17 = arith.select %15, %3, %16 : vector<128x128xi1>, vector<128x128xbf16>
    %cst_6 = arith.constant dense<0.000000e+00> : vector<16x128xf32>
    %18 = tpu.matmul %13, %17, %cst_6 {dimension_numbers = #tpu.dot_dimension_numbers<[1], [1], [0], [0], [0, 0, 1, 0], [], []>} : vector<16x128xbf16>, vector<128x128xbf16>, vector<16x128xf32> -> vector<16x128xf32>
    %c0_7 = arith.constant 0 : index
    %c0_8 = arith.constant 0 : index
    %19 = vector.load %arg4[%c0_7, %c0_8] : memref<1x128xf32, #tpu.memory_space<vmem>>, vector<1x128xf32>
    %20 = vector.broadcast %19 : vector<1x128xf32> to vector<16x128xf32>
    %21 = arith.addf %18, %20 : vector<16x128xf32>
    %cst_9 = arith.constant 0.000000e+00 : f32
    %22 = vector.broadcast %cst_9 : f32 to vector<16x128xf32>
    %23 = arith.maximumf %21, %22 : vector<16x128xf32>
    %c0_10 = arith.constant 0 : index
    %c0_11 = arith.constant 0 : index
    %24 = vector.load %arg5[%c0_10, %c0_11] : memref<16x128xf32, #tpu.memory_space<vmem>>, vector<16x128xf32>
    tpu.vector_store %arg5[%c0_10, %c0_11], %23 {strides = array<i32>} : memref<16x128xf32, #tpu.memory_space<vmem>>, vector<16x128xf32>,
    return
  }
  func.func @transform_0(%arg0: i32, %arg1: i32) -> (i32, i32) {
    %c0_i32 = arith.constant 0 : i32
    %c0_i32_0 = arith.constant 0 : i32
    return %arg0, %c0_i32 : i32, i32
  }
  func.func @transform_1(%arg0: i32, %arg1: i32) -> (i32, i32) {
    %c0_i32 = arith.constant 0 : i32
    %c0_i32_0 = arith.constant 0 : i32
    return %arg1, %c0_i32 : i32, i32
  }
  func.func @transform_2(%arg0: i32, %arg1: i32) -> (i32, i32) {
    %c0_i32 = arith.constant 0 : i32
    %c0_i32_0 = arith.constant 0 : i32
    return %c0_i32, %arg1 : i32, i32
  }
  func.func @transform_3(%arg0: i32, %arg1: i32) -> (i32, i32) {
    %c0_i32 = arith.constant 0 : i32
    return %arg0, %arg1 : i32, i32
  }
}

</mosaic_0001>

<bundles_post_ra>
// kernel: tpu_custom_call.1
= control target key start
LH: loop header
LB: loop body
LE: loop exit
PB: predicated region body
PF: predicated region fallthrough
CT: control target
= control target key end

     0   :  { %8 = vsyncpa [#allocation3], 0  ;;  %v45_v0 = vlaneseq  ;;  %v193_v1 = vmov 0.0   ;;  %vm194_vm0 = vmmov 0   ;;  %v195_v8 = vmov 0   ;;  %s297_s0 = inlined_call_operand.vmem [shape: f32[8,32], index: 0, kind: input, shape index: {}]   ;;  %s298_s1 = inlined_call_operand.vmem [shape: f32[64,32], index: 1, kind: input, shape index: {}]   ;;  %s299_s2 = inlined_call_operand.vmem [shape: f32[1,64], index: 2, kind: input, shape index: {}]   ;;  %s300_s3 = inlined_call_operand.hbm [shape: f32[8,64], index: 3, kind: output, shape index: {}]  }
   0x1   :  { %143 = vmatprep.subr.bf16.mxu0 %v193_v1  ;;  %159 = vmatprep.mubr.msk.bf16.mxu0 %vm194_vm0, %v193_v1  ;;  %v21_v4 = vld [vmem:[%s298_s1] sm:$0xff]  ;;  %v22_v5 = vld [vmem:[%s298_s1 + $0x8] sm:$0xff]  ;;  %v23_v11 = vld [vmem:[%s298_s1 + $0x10] sm:$0xff] }
   0x2   :  { %v46_v2 = vand.u32 127, %v45_v0  ;;  %v51_v3 = vshrl.u32 %v45_v0, 7  ;;  %v37_v7 = vpack.c.bf16 %v22_v5, %v21_v4  ;;  %v24_v12 = vld [vmem:[%s298_s1 + $0x18] sm:$0xff]  ;;  %v25_v16 = vld [vmem:[%s298_s1 + $0x20] sm:$0xff]  ;;  %v26_v17 = vld [vmem:[%s298_s1 + $0x28] sm:$0xff] }
   0x3   :  { %v38_v14 = vpack.c.bf16 %v24_v12, %v23_v11  ;;  %v39_v18 = vpack.c.bf16 %v26_v17, %v25_v16  ;;  %v27_v20 = vld [vmem:[%s298_s1 + $0x30] sm:$0xff]  ;;  %v28_v21 = vld [vmem:[%s298_s1 + $0x38] sm:$0xff]  ;;  %v29_v24 = vld [vmem:[%s298_s1 + $0x40] sm:$0xff] }
   0x4   :  { %vm47_vm1 = vcmp.lt.s32.totalorder %v46_v2, 32  ;;  %v52_v6 = vsub.s32 0, %v51_v3  ;;  %v40_v22 = vpack.c.bf16 %v28_v21, %v27_v20  ;;  %v30_v25 = vld [vmem:[%s298_s1 + $0x48] sm:$0xff]  ;;  %v31_v28 = vld [vmem:[%s298_s1 + $0x50] sm:$0xff]  ;;  %v32_v29 = vld [vmem:[%s298_s1 + $0x58] sm:$0xff] }
   0x5   :  { %vm48_vm2 = vmpackc.low %vm47_vm1, %vm47_vm1  ;;  %v41_v26 = vpack.c.bf16 %v30_v25, %v29_v24  ;;  %v42_v30 = vpack.c.bf16 %v32_v29, %v31_v28  ;;  %v33_v32 = vld [vmem:[%s298_s1 + $0x60] sm:$0xff]  ;;  %v34_v33 = vld [vmem:[%s298_s1 + $0x68] sm:$0xff] }
   0x6   :  { %v49_v9 = vsel %vm48_vm2, 65537, %v195_v8  ;;  %v43_v34 = vpack.c.bf16 %v34_v33, %v33_v32  ;;  %v35_v36 = vld [vmem:[%s298_s1 + $0x70] sm:$0xff]  ;;  %v36_v37 = vld [vmem:[%s298_s1 + $0x78] sm:$0xff]  ;;  %v18_v40 = vld [vmem:[%s297_s0] sm:$0xff] }
   0x7   :  { %v53_v10 = vrot.slane %v49_v9, %v52_v6  ;;  %v44_v38 = vpack.c.bf16 %v36_v37, %v35_v36  ;;  %v19_v41 = vld [vmem:[%s297_s0 + $0x8] sm:$0xff]  ;;  %v132_v43 = vld [vmem:[%s299_s2] ss:$0 sm:$0xff] }
   0x8   :  { %v20_v42 = vpack.c.bf16 %v19_v41, %v18_v40 }
   0x9   :  { %vm54_vm3 = vcmp.ne.s16.totalorder %v53_v10, 0 }
   0xa   :  { %v56_v13 = vsel %vm54_vm3, %v37_v7, 0  ;;  %v57_v15 = vsel %vm54_vm3, %v38_v14, 0  ;;  %v58_v19 = vsel %vm54_vm3, %v39_v18, 0  ;;  %v59_v23 = vsel %vm54_vm3, %v40_v22, 0 }
   0xb   :  { %144 = vmatpush3.bf16.xpose.msra.mxu0 %v56_v13  ;;  %v60_v27 = vsel %vm54_vm3, %v41_v26, 0  ;;  %v61_v31 = vsel %vm54_vm3, %v42_v30, 0  ;;  %v62_v35 = vsel %vm54_vm3, %v43_v34, 0  ;;  %v63_v39 = vsel %vm54_vm3, %v44_v38, 0 }
   0xc   :  { %145 = vmatprep.subr.bf16.mxu0 %v193_v1 }
  0x13   :  { %146 = vmatpush3.bf16.xpose.msra.mxu0 %v57_v15 }
  0x14   :  { %147 = vmatprep.subr.bf16.mxu0 %v193_v1 }
  0x1b   :  { %148 = vmatpush3.bf16.xpose.msra.mxu0 %v58_v19 }
  0x1c   :  { %149 = vmatprep.subr.bf16.mxu0 %v193_v1 }
  0x23   :  { %150 = vmatpush3.bf16.xpose.msra.mxu0 %v59_v23 }
  0x24   :  { %151 = vmatprep.subr.bf16.mxu0 %v193_v1 }
  0x2b   :  { %152 = vmatpush3.bf16.xpose.msra.mxu0 %v60_v27 }
  0x2c   :  { %153 = vmatprep.subr.bf16.mxu0 %v193_v1 }
  0x33   :  { %154 = vmatpush3.bf16.xpose.msra.mxu0 %v61_v31 }
  0x34   :  { %155 = vmatprep.subr.bf16.mxu0 %v193_v1 }
  0x3b   :  { %156 = vmatpush3.bf16.xpose.msra.mxu0 %v62_v35 }
  0x3c   :  { %157 = vmatprep.subr.bf16.mxu0 %v193_v1 }
  0x43   :  { %158 = vmatpush3.bf16.xpose.msra.mxu0 %v63_v39 }
  0x4a   :  { %160 = vmatmul.mubr.msk.bf16.vlgmr.msra.gmra.mrb[0].mxu0 %vm54_vm3, %v20_v42 }
 0x11d   :  { %v105_v44 = vpop.f32.mrb[0].mxu0 }
 0x11e   :  { %v106_v45 = vadd.f32 %v132_v43, %v105_v44  ;;  %v161_v46 = vpop.f32.mrb[1].mxu0 }
 0x11f   :  { %v108_v47 = vpop.f32.mrb[2].mxu0 }
 0x120   :  { %v112_v48 = vmax.f32 %v106_v45, 0.0  ;;  %v109_v49 = vadd.f32 %v132_v43, %v108_v47  ;;  %v162_v50 = vpop.f32.mrb[3].mxu0 }
 0x122   :  { %114 = vst [vmem:[#allocation2] sm:$0xff] %v112_v48  ;;  %v113_v51 = vmax.f32 %v109_v49, 0.0 }
 0x124   :  { %115 = vst [vmem:[#allocation2 + $0x8] sm:$0xff] %v113_v51 }
 0x125   :  { %120 = vsyncadd [#allocation3], 128  ;;  %s196_s1 = smov [#allocation2]  }
 0x126   :  { %s121_s0 = sshll.u32 %s196_s1, 4  ;;  %s122_s0 = int_to_ptr.vmem [resolvable:$true] %s121_s0 }
 0x127   :  { %s169_s23 = scalar_lea.vmem %s122_s0, 128  ;;  %s173_s24 = scalar_lea.vmem %s122_s0, 256 }
 0x128   :  { %p170_p0 = scmp.ne.s32.totalorder %s122_s0, %s169_s23  ;;  %p174_p1 = scmp.lt.s32.totalorder %s122_s0, %s122_s0 }
 0x129   :  { %p175_p2 = scmp.lt.s32.totalorder %s173_s24, %s169_s23 }
 0x12b   :  { %p176_p3 = por %p175_p2, %p174_p1 }
 0x12d   :  { %p177_p4 = pnand %p176_p3, %p170_p0 }
 0x12f   :  { %180 = shalt.err (!%p177_p4)
}
 0x130   :  { %s181_s26 = scalar_lea.hbm %s300_s3, 128 }
 0x131   :  { %p182_p5 = scmp.ne.s32.totalorder %s300_s3, %s181_s26  ;;  %p185_p6 = scmp.lt.u32.totalorder %s181_s26, %s300_s3 }
 0x133   :  { %p187_p7 = pnand %p185_p6, %p182_p5 }
 0x135   :  { %190 = shalt.err (!%p187_p7)
}
 0x136   :  { %s197_s4 = smov 128   ;;  %s198_s5 = smov 8  }
 0x137   :  { %127 = dma.vmem_to_hbm [thread:$0]  %s122_s0, 128, %s300_s3, [#allocation3], %s197_s4, %s197_s4, %s198_s5  }
 0x138   :  { %191 = dma.done.wait [#allocation3], 256  }
 0x139   :  { %192 = vsyncadd [#allocation3], 4294967040 }
 0x13a   :  { %131 = vsyncpa [#allocation3], 1 }

</bundles_post_ra>
